<compile_context>
chip_gen: v6e
topology: v6e:2x2x1
jax: 0.10.0
libtpu: 0.0.40
codegen_flags: <defaults>
</compile_context>

<pallas_src>
import jax
import jax.numpy as jnp
from jax.experimental import pallas as pl
from jax.experimental.pallas import tpu as pltpu


def mylinear_kernel(x_ref, w1_ref, b1_ref, w2_ref, b2_ref, sign_ref, o_ref):
    # Fused: linear1 -> tanh -> linear2 -> sigmoid + const -> negate column 0.
    x = x_ref[...]                                                  # (TILE_B, D)
    h = jnp.dot(x.astype(jnp.bfloat16), w1_ref[...],
                preferred_element_type=jnp.float32)                 # (TILE_B, H) f32 acc
    h = jnp.tanh(h + b1_ref[...])                                   # bias (1, H) broadcasts
    y = jnp.dot(h.astype(jnp.bfloat16), w2_ref[...],
                preferred_element_type=jnp.float32)                 # (TILE_B, D) f32 acc
    y = y + b2_ref[...]                                             # bias (1, D) broadcasts
    out = (jax.nn.sigmoid(y) + jnp.float32(0.618)) * sign_ref[...]  # column-0 negation
    o_ref[...] = out.astype(o_ref.dtype)


def _round_up(x, m):
    return ((x + m - 1) // m) * m


def _vmem_capacity_bytes():
    """Physical VMEM of the local TPU; conservative (v7x per-TC) fallback."""
    try:
        cap = int(getattr(pltpu.get_tpu_info(), "vmem_capacity_bytes", 0))
        if cap > 0:
            return cap
    except Exception:
        pass
    return 64 * 1024 * 1024


def my_linear(x, w1, b1, w2, b2):
    B, D = x.shape
    H = w1.shape[1]  # 2 * D
    assert w1.shape == (D, H) and w2.shape == (H, D)

    b1 = jnp.asarray(b1, jnp.float32).reshape(1, H)
    b2 = jnp.asarray(b2, jnp.float32).reshape(1, D)
    # bf16 MXU operands (cast once here); also halves resident weight VMEM.
    w1_bf = w1.astype(jnp.bfloat16)
    w2_bf = w2.astype(jnp.bfloat16)
    # (1, D) sign row: +1 everywhere except -1 in column 0 -> single in-kernel vmul.
    sign = jnp.ones((1, D), jnp.float32).at[0, 0].set(-1.0)

    bpe = jnp.dtype(x.dtype).itemsize
    # Resident (constant index_map, single-buffered) operands:
    resident = 2 * D * H + 2 * H * D + 4 * H + 4 * D + 4 * D
    # Per-batch-row VMEM: double-buffered x/out tiles + f32/bf16 intermediates.
    per_row = 2 * bpe * D + 2 * bpe * D + 6 * H + 14 * D

    cap = _vmem_capacity_bytes()
    usable = int(cap * 0.80)                 # headroom for internal compiler scratch
    tile_budget = max(usable - resident, 8 * per_row)

    # VMEM-budget-driven batch tile; ragged last block handled via pl.cdiv.
    b_ceil = max(8, _round_up(B, 8))
    tile_b = 8
    for cand in (16, 32, 64, 128, 256, 512):
        if cand > b_ceil or cand * per_row > tile_budget:
            break
        tile_b = cand
    grid = (pl.cdiv(B, tile_b),)
    # TODO(synk): for D where even bf16 resident weights exceed the per-TC budget
    # (v7x, D >~ 2.5K), add an H-reduction grid axis ("arbitrary") with a
    # pl.when(k==0)-zeroed f32 accumulator and stream W1/W2 tiles instead.

    cost = pl.CostEstimate(
        flops=4 * B * D * H,                       # two matmuls, 2*B*D*H each
        transcendentals=B * (H + 2 * D),           # tanh + sigmoid(exp + recip)
        bytes_accessed=2 * bpe * B * D             # x in, y out
        + 2 * (D * H + H * D)                      # bf16 weights
        + 4 * (H + 2 * D),                         # f32 biases + sign row
    )
    # Megacore split only pays off with several independent batch tiles.
    semantics = ("parallel",) if grid[0] >= 2 else ("arbitrary",)

    def run(single_buffer_resident):
        mode = pl.Buffered(1) if single_buffer_resident else None
        res_mult = 1 if single_buffer_resident else 2
        vmem_needed = res_mult * resident + tile_b * per_row
        vmem_limit = min(usable, max(2 * vmem_needed, 16 * 1024 * 1024))

        def res_spec(shape):
            return pl.BlockSpec(shape, lambda i: (0, 0), pipeline_mode=mode)

        return pl.pallas_call(
            mylinear_kernel,
            out_shape=jax.ShapeDtypeStruct((B, D), x.dtype),
            grid_spec=pl.GridSpec(
                grid=grid,
                in_specs=[
                    pl.BlockSpec((tile_b, D), lambda i: (i, 0)),   # x: streamed per tile
                    res_spec((D, H)),                              # w1 (bf16), resident
                    res_spec((1, H)),                              # b1 (f32), resident
                    res_spec((H, D)),                              # w2 (bf16), resident
                    res_spec((1, D)),                              # b2 (f32), resident
                    res_spec((1, D)),                              # sign row, resident
                ],
                out_specs=pl.BlockSpec((tile_b, D), lambda i: (i, 0)),
            ),
            compiler_params=pltpu.CompilerParams(
                dimension_semantics=semantics,
                vmem_limit_bytes=int(vmem_limit),
            ),
            cost_estimate=cost,
        )(x, w1_bf, b1, w2_bf, b2, sign)

    try:
        return run(True)
    except Exception:
        # TODO(synk): drop fallback once pl.Buffered(1) single-buffering is universal.
        return run(False)


def init_params(key, dim):
    """Deterministic init mimicking PyTorch nn.Linear default (uniform ±1/sqrt(fan_in))."""
    k1, k2, k3, k4 = jax.random.split(key, 4)
    bound1 = 1.0 / jnp.sqrt(dim)
    bound2 = 1.0 / jnp.sqrt(2 * dim)
    # Stored as (in, out): transpose of PyTorch's (out, in).
    w1 = jax.random.uniform(k1, (dim, 2 * dim), jnp.float32, -bound1, bound1)
    b1 = jax.random.uniform(k2, (1, 2 * dim), jnp.float32, -bound1, bound1)
    w2 = jax.random.uniform(k3, (2 * dim, dim), jnp.float32, -bound2, bound2)
    b2 = jax.random.uniform(k4, (1, dim), jnp.float32, -bound2, bound2)
    return w1, b1, w2, b2


def reference(x, w1, b1, w2, b2):
    h = jnp.tanh(x @ w1 + b1)
    y = jax.nn.sigmoid(h @ w2 + b2) + 0.618
    return y.at[:, 0].multiply(-1.0)


if __name__ == "__main__":
    key = jax.random.PRNGKey(0)
    kx, kp, kx2, kp2 = jax.random.split(key, 4)

    # Small shape matching the module spec (batch=8, size_in=32).
    B, D = 8, 32
    x = jax.random.normal(kx, (B, D), jnp.float32)
    params = init_params(kp, D)

    out = jax.block_until_ready(my_linear(x, *params))
    ref = reference(x, *params)
    assert out.shape == (B, D)
    # bf16 MXU operands -> tolerance looser than the previous pure-f32 path.
    assert jnp.allclose(out, ref, atol=2e-2, rtol=2e-2), "mismatch vs reference (small)"

    # Larger, ragged batch: exercises cdiv grid, padded last block and megacore path.
    B2, D2 = 136, 128
    x2 = jax.random.normal(kx2, (B2, D2), jnp.float32)
    p2 = init_params(kp2, D2)

    out2 = jax.block_until_ready(my_linear(x2, *p2))
    ref2 = reference(x2, *p2)
    assert out2.shape == (B2, D2)
    assert jnp.allclose(out2, ref2, atol=2e-2, rtol=2e-2), "mismatch vs reference (ragged)"

    print("KERNEL_OK")
</pallas_src>

<mosaic_0001>
module attributes {stable_mosaic.version = 11 : i64} {
  func.func @mylinear_kernel(%arg0: i32, %arg1: memref<8x32xf32, #tpu.memory_space<vmem>>, %arg2: memref<32x64xbf16, #tpu.memory_space<vmem>>, %arg3: memref<1x64xf32, #tpu.memory_space<vmem>>, %arg4: memref<64x32xbf16, #tpu.memory_space<vmem>>, %arg5: memref<1x32xf32, #tpu.memory_space<vmem>>, %arg6: memref<1x32xf32, #tpu.memory_space<vmem>>, %arg7: memref<8x32xf32, #tpu.memory_space<vmem>>) attributes {dimension_semantics = [#tpu.dimension_semantics<arbitrary>], iteration_bounds = array<i64: 1>, scalar_prefetch = 0 : i64, scratch_operands = 0 : i64, tpu.core_type = #tpu.core_type<tc>, window_params = [{transform_indices = @transform_0, window_bounds = array<i64: 8, 32>}, {pipeline_mode = #tpu.pipeline_mode<synchronous>, transform_indices = @transform_1, window_bounds = array<i64: 32, 64>}, {pipeline_mode = #tpu.pipeline_mode<synchronous>, transform_indices = @transform_2, window_bounds = array<i64: 1, 64>}, {pipeline_mode = #tpu.pipeline_mode<synchronous>, transform_indices = @transform_3, window_bounds = array<i64: 64, 32>}, {pipeline_mode = #tpu.pipeline_mode<synchronous>, transform_indices = @transform_4, window_bounds = array<i64: 1, 32>}, {pipeline_mode = #tpu.pipeline_mode<synchronous>, transform_indices = @transform_5, window_bounds = array<i64: 1, 32>}, {transform_indices = @transform_6, window_bounds = array<i64: 8, 32>}]} {
    %c0 = arith.constant 0 : index
    %c0_0 = arith.constant 0 : index
    %0 = vector.load %arg1[%c0, %c0_0] : memref<8x32xf32, #tpu.memory_space<vmem>>, vector<8x32xf32>
    %1 = arith.truncf %0 : vector<8x32xf32> to vector<8x32xbf16>
    %c0_1 = arith.constant 0 : index
    %c0_2 = arith.constant 0 : index
    %2 = vector.load %arg2[%c0_1, %c0_2] : memref<32x64xbf16, #tpu.memory_space<vmem>>, vector<32x64xbf16>
    %cst = arith.constant dense<0.000000e+00> : vector<8x64xf32>
    %3 = tpu.matmul %1, %2, %cst {dimension_numbers = #tpu.dot_dimension_numbers<[1], [0], [0], [1], [0, 0, 1, 1], [], []>} : vector<8x32xbf16>, vector<32x64xbf16>, vector<8x64xf32> -> vector<8x64xf32>
    %c0_3 = arith.constant 0 : index
    %c0_4 = arith.constant 0 : index
    %4 = vector.load %arg3[%c0_3, %c0_4] : memref<1x64xf32, #tpu.memory_space<vmem>>, vector<1x64xf32>
    %5 = vector.broadcast %4 : vector<1x64xf32> to vector<8x64xf32>
    %6 = arith.addf %3, %5 : vector<8x64xf32>
    %7 = math.tanh %6 : vector<8x64xf32>
    %8 = arith.truncf %7 : vector<8x64xf32> to vector<8x64xbf16>
    %c0_5 = arith.constant 0 : index
    %c0_6 = arith.constant 0 : index
    %9 = vector.load %arg4[%c0_5, %c0_6] : memref<64x32xbf16, #tpu.memory_space<vmem>>, vector<64x32xbf16>
    %cst_7 = arith.constant dense<0.000000e+00> : vector<8x32xf32>
    %10 = tpu.matmul %8, %9, %cst_7 {dimension_numbers = #tpu.dot_dimension_numbers<[1], [0], [0], [1], [0, 0, 1, 1], [], []>} : vector<8x64xbf16>, vector<64x32xbf16>, vector<8x32xf32> -> vector<8x32xf32>
    %c0_8 = arith.constant 0 : index
    %c0_9 = arith.constant 0 : index
    %11 = vector.load %arg5[%c0_8, %c0_9] : memref<1x32xf32, #tpu.memory_space<vmem>>, vector<1x32xf32>
    %12 = vector.broadcast %11 : vector<1x32xf32> to vector<8x32xf32>
    %13 = arith.addf %10, %12 : vector<8x32xf32>
    %14 = arith.negf %13 : vector<8x32xf32>
    %15 = math.exp %14 : vector<8x32xf32>
    %cst_10 = arith.constant 1.000000e+00 : f32
    %16 = vector.broadcast %cst_10 : f32 to vector<8x32xf32>
    %17 = arith.addf %16, %15 : vector<8x32xf32>
    %18 = arith.divf %16, %17 : vector<8x32xf32>
    %cst_11 = arith.constant 0.61799997 : f32
    %19 = vector.broadcast %cst_11 : f32 to vector<8x32xf32>
    %20 = arith.addf %18, %19 : vector<8x32xf32>
    %c0_12 = arith.constant 0 : index
    %c0_13 = arith.constant 0 : index
    %21 = vector.load %arg6[%c0_12, %c0_13] : memref<1x32xf32, #tpu.memory_space<vmem>>, vector<1x32xf32>
    %22 = vector.broadcast %21 : vector<1x32xf32> to vector<8x32xf32>
    %23 = arith.mulf %20, %22 : vector<8x32xf32>
    %c0_14 = arith.constant 0 : index
    %c0_15 = arith.constant 0 : index
    %24 = vector.load %arg7[%c0_14, %c0_15] : memref<8x32xf32, #tpu.memory_space<vmem>>, vector<8x32xf32>
    tpu.vector_store %arg7[%c0_14, %c0_15], %23 {strides = array<i32>} : memref<8x32xf32, #tpu.memory_space<vmem>>, vector<8x32xf32>,
    return
  }
  func.func @transform_0(%arg0: i32) -> (i32, i32) {
    %c0_i32 = arith.constant 0 : i32
    %c0_i32_0 = arith.constant 0 : i32
    return %arg0, %c0_i32 : i32, i32
  }
  func.func @transform_1(%arg0: i32) -> (i32, i32) {
    %c0_i32 = arith.constant 0 : i32
    %c0_i32_0 = arith.constant 0 : i32
    %c0_i32_1 = arith.constant 0 : i32
    return %c0_i32, %c0_i32_0 : i32, i32
  }
  func.func @transform_2(%arg0: i32) -> (i32, i32) {
    %c0_i32 = arith.constant 0 : i32
    %c0_i32_0 = arith.constant 0 : i32
    %c0_i32_1 = arith.constant 0 : i32
    return %c0_i32, %c0_i32_0 : i32, i32
  }
  func.func @transform_3(%arg0: i32) -> (i32, i32) {
    %c0_i32 = arith.constant 0 : i32
    %c0_i32_0 = arith.constant 0 : i32
    %c0_i32_1 = arith.constant 0 : i32
    return %c0_i32, %c0_i32_0 : i32, i32
  }
  func.func @transform_4(%arg0: i32) -> (i32, i32) {
    %c0_i32 = arith.constant 0 : i32
    %c0_i32_0 = arith.constant 0 : i32
    %c0_i32_1 = arith.constant 0 : i32
    return %c0_i32, %c0_i32_0 : i32, i32
  }
  func.func @transform_5(%arg0: i32) -> (i32, i32) {
    %c0_i32 = arith.constant 0 : i32
    %c0_i32_0 = arith.constant 0 : i32
    %c0_i32_1 = arith.constant 0 : i32
    return %c0_i32, %c0_i32_0 : i32, i32
  }
  func.func @transform_6(%arg0: i32) -> (i32, i32) {
    %c0_i32 = arith.constant 0 : i32
    %c0_i32_0 = arith.constant 0 : i32
    return %arg0, %c0_i32 : i32, i32
  }
}

module attributes {stable_mosaic.version = 11 : i64} {
  func.func @mylinear_kernel(%arg0: i32, %arg1: memref<8x32xf32, #tpu.memory_space<vmem>>, %arg2: memref<32x64xbf16, #tpu.memory_space<vmem>>, %arg3: memref<1x64xf32, #tpu.memory_space<vmem>>, %arg4: memref<64x32xbf16, #tpu.memory_space<vmem>>, %arg5: memref<1x32xf32, #tpu.memory_space<vmem>>, %arg6: memref<1x32xf32, #tpu.memory_space<vmem>>, %arg7: memref<8x32xf32, #tpu.memory_space<vmem>>) attributes {dimension_semantics = [#tpu.dimension_semantics<arbitrary>], iteration_bounds = array<i64: 1>, scalar_prefetch = 0 : i64, scratch_operands = 0 : i64, tpu.core_type = #tpu.core_type<tc>, window_params = [{transform_indices = @transform_0, window_bounds = array<i64: 8, 32>}, {pipeline_mode = #tpu.pipeline_mode<synchronous>, transform_indices = @transform_1, window_bounds = array<i64: 32, 64>}, {pipeline_mode = #tpu.pipeline_mode<synchronous>, transform_indices = @transform_2, window_bounds = array<i64: 1, 64>}, {pipeline_mode = #tpu.pipeline_mode<synchronous>, transform_indices = @transform_3, window_bounds = array<i64: 64, 32>}, {pipeline_mode = #tpu.pipeline_mode<synchronous>, transform_indices = @transform_4, window_bounds = array<i64: 1, 32>}, {pipeline_mode = #tpu.pipeline_mode<synchronous>, transform_indices = @transform_5, window_bounds = array<i64: 1, 32>}, {transform_indices = @transform_6, window_bounds = array<i64: 8, 32>}]} {
    %c0 = arith.constant 0 : index
    %c0_0 = arith.constant 0 : index
    %0 = vector.load %arg1[%c0, %c0_0] : memref<8x32xf32, #tpu.memory_space<vmem>>, vector<8x32xf32>
    %1 = arith.truncf %0 : vector<8x32xf32> to vector<8x32xbf16>
    %c0_1 = arith.constant 0 : index
    %c0_2 = arith.constant 0 : index
    %2 = vector.load %arg2[%c0_1, %c0_2] : memref<32x64xbf16, #tpu.memory_space<vmem>>, vector<32x64xbf16>
    %cst = arith.constant dense<0.000000e+00> : vector<8x64xf32>
    %3 = tpu.matmul %1, %2, %cst {dimension_numbers = #tpu.dot_dimension_numbers<[1], [0], [0], [1], [0, 0, 1, 1], [], []>} : vector<8x32xbf16>, vector<32x64xbf16>, vector<8x64xf32> -> vector<8x64xf32>
    %c0_3 = arith.constant 0 : index
    %c0_4 = arith.constant 0 : index
    %4 = vector.load %arg3[%c0_3, %c0_4] : memref<1x64xf32, #tpu.memory_space<vmem>>, vector<1x64xf32>
    %5 = vector.broadcast %4 : vector<1x64xf32> to vector<8x64xf32>
    %6 = arith.addf %3, %5 : vector<8x64xf32>
    %7 = math.tanh %6 : vector<8x64xf32>
    %8 = arith.truncf %7 : vector<8x64xf32> to vector<8x64xbf16>
    %c0_5 = arith.constant 0 : index
    %c0_6 = arith.constant 0 : index
    %9 = vector.load %arg4[%c0_5, %c0_6] : memref<64x32xbf16, #tpu.memory_space<vmem>>, vector<64x32xbf16>
    %cst_7 = arith.constant dense<0.000000e+00> : vector<8x32xf32>
    %10 = tpu.matmul %8, %9, %cst_7 {dimension_numbers = #tpu.dot_dimension_numbers<[1], [0], [0], [1], [0, 0, 1, 1], [], []>} : vector<8x64xbf16>, vector<64x32xbf16>, vector<8x32xf32> -> vector<8x32xf32>
    %c0_8 = arith.constant 0 : index
    %c0_9 = arith.constant 0 : index
    %11 = vector.load %arg5[%c0_8, %c0_9] : memref<1x32xf32, #tpu.memory_space<vmem>>, vector<1x32xf32>
    %12 = vector.broadcast %11 : vector<1x32xf32> to vector<8x32xf32>
    %13 = arith.addf %10, %12 : vector<8x32xf32>
    %14 = arith.negf %13 : vector<8x32xf32>
    %15 = math.exp %14 : vector<8x32xf32>
    %cst_10 = arith.constant 1.000000e+00 : f32
    %16 = vector.broadcast %cst_10 : f32 to vector<8x32xf32>
    %17 = arith.addf %16, %15 : vector<8x32xf32>
    %18 = arith.divf %16, %17 : vector<8x32xf32>
    %cst_11 = arith.constant 0.61799997 : f32
    %19 = vector.broadcast %cst_11 : f32 to vector<8x32xf32>
    %20 = arith.addf %18, %19 : vector<8x32xf32>
    %c0_12 = arith.constant 0 : index
    %c0_13 = arith.constant 0 : index
    %21 = vector.load %arg6[%c0_12, %c0_13] : memref<1x32xf32, #tpu.memory_space<vmem>>, vector<1x32xf32>
    %22 = vector.broadcast %21 : vector<1x32xf32> to vector<8x32xf32>
    %23 = arith.mulf %20, %22 : vector<8x32xf32>
    %c0_14 = arith.constant 0 : index
    %c0_15 = arith.constant 0 : index
    %24 = vector.load %arg7[%c0_14, %c0_15] : memref<8x32xf32, #tpu.memory_space<vmem>>, vector<8x32xf32>
    tpu.vector_store %arg7[%c0_14, %c0_15], %23 {strides = array<i32>} : memref<8x32xf32, #tpu.memory_space<vmem>>, vector<8x32xf32>,
    return
  }
  func.func @transform_0(%arg0: i32) -> (i32, i32) {
    %c0_i32 = arith.constant 0 : i32
    %c0_i32_0 = arith.constant 0 : i32
    return %arg0, %c0_i32 : i32, i32
  }
  func.func @transform_1(%arg0: i32) -> (i32, i32) {
    %c0_i32 = arith.constant 0 : i32
    %c0_i32_0 = arith.constant 0 : i32
    %c0_i32_1 = arith.constant 0 : i32
    return %c0_i32, %c0_i32_0 : i32, i32
  }
  func.func @transform_2(%arg0: i32) -> (i32, i32) {
    %c0_i32 = arith.constant 0 : i32
    %c0_i32_0 = arith.constant 0 : i32
    %c0_i32_1 = arith.constant 0 : i32
    return %c0_i32, %c0_i32_0 : i32, i32
  }
  func.func @transform_3(%arg0: i32) -> (i32, i32) {
    %c0_i32 = arith.constant 0 : i32
    %c0_i32_0 = arith.constant 0 : i32
    %c0_i32_1 = arith.constant 0 : i32
    return %c0_i32, %c0_i32_0 : i32, i32
  }
  func.func @transform_4(%arg0: i32) -> (i32, i32) {
    %c0_i32 = arith.constant 0 : i32
    %c0_i32_0 = arith.constant 0 : i32
    %c0_i32_1 = arith.constant 0 : i32
    return %c0_i32, %c0_i32_0 : i32, i32
  }
  func.func @transform_5(%arg0: i32) -> (i32, i32) {
    %c0_i32 = arith.constant 0 : i32
    %c0_i32_0 = arith.constant 0 : i32
    %c0_i32_1 = arith.constant 0 : i32
    return %c0_i32, %c0_i32_0 : i32, i32
  }
  func.func @transform_6(%arg0: i32) -> (i32, i32) {
    %c0_i32 = arith.constant 0 : i32
    %c0_i32_0 = arith.constant 0 : i32
    return %arg0, %c0_i32 : i32, i32
  }
}

</mosaic_0001>

<bundles_post_ra>
// kernel: tpu_custom_call.1
= control target key start
LH: loop header
LB: loop body
LE: loop exit
PB: predicated region body
PF: predicated region fallthrough
CT: control target
= control target key end

     0   :  { %v286_v1 = vmov 0.0   ;;  %vm287_vm0 = vmmov 0   ;;  %s359_s0 = inlined_call_operand.vmem [shape: f32[8,32], index: 0, kind: input, shape index: {}]   ;;  %s360_s1 = inlined_call_operand.vmem [shape: bf16[32,64], index: 1, kind: input, shape index: {}]   ;;  %s361_s2 = inlined_call_operand.vmem [shape: f32[1,64], index: 2, kind: input, shape index: {}]   ;;  %s362_s3 = inlined_call_operand.vmem [shape: bf16[64,32], index: 3, kind: input, shape index: {}]   ;;  %s363_s4 = inlined_call_operand.vmem [shape: f32[1,32], index: 4, kind: input, shape index: {}]   ;;  %s364_s5 = inlined_call_operand.vmem [shape: f32[1,32], index: 5, kind: input, shape index: {}]   ;;  %s365_s6 = inlined_call_operand.hbm [shape: f32[8,32], index: 6, kind: output, shape index: {}]  }
   0x1   :  { %v252_v0 = vld [vmem:[%s360_s1 + $0x8] sm:$0xff]   ;;  %229 = vmatprep.subr.bf16.mxu0 %v286_v1  ;;  %237 = vmatprep.subr.bf16.mxu1 %v286_v1  ;;  %v253_v2 = vld [vmem:[%s360_s1] sm:$0xff]  }
   0x2   :  { %230 = vmatpush3.bf16.msra.mxu0 %v252_v0  ;;  %233 = vmatprep.mubr.msk.bf16.mxu0 %vm287_vm0, %v286_v1  ;;  %v25_v3 = vld [vmem:[%s359_s0] sm:$0xff] }
   0x3   :  { %231 = vmatprep.subr.bf16.mxu0 %v286_v1  ;;  %245 = vmatprep.mubr.msk.bf16.mxu1 %vm287_vm0, %v286_v1  ;;  %v26_v4 = vpack.c.bf16 %v25_v3, %v25_v3 }
   0x4   :  { %11 = vsyncpa [#allocation3], 0  ;;  %vm50_vm1 = vcmask 261120   ;;  %v254_v5 = vld [vmem:[%s362_s3 + $0x18] sm:$0xff]   ;;  %v255_v6 = vld [vmem:[%s362_s3 + $0x10] sm:$0xff]   ;;  %vm135_vm2 = vcmask 523264  }
   0x5   :  { %238 = vmatpush3.bf16.msra.mxu1 %v254_v5  ;;  %v256_v7 = vld [vmem:[%s362_s3 + $0x8] sm:$0xff]   ;;  %v257_v8 = vld [vmem:[%s362_s3] sm:$0xff]   ;;  %s288_s13 = smov [#allocation2]  }
   0x6   :  { %232 = vmatpush3.bf16.msra.mxu0 %v253_v2  ;;  %239 = vmatprep.subr.bf16.mxu1 %v286_v1  ;;  %v209_v9 = vld [vmem:[%s361_s2] ss:$0 sm:$0xff]  ;;  %s201_s14 = sshll.u32 %s288_s13, 4  ;;  %s202_s14 = int_to_ptr.vmem [resolvable:$true] %s201_s14 }
   0x7   :  { %v213_v17 = vld [vmem:[%s363_s4] ss:$0 sm:$0xff]  ;;  %s264_s4 = scalar_lea.vmem %s202_s14, 128  ;;  %p269_p1 = scmp.lt.s32.totalorder %s202_s14, %s202_s14 }
   0x8   :  { %v220_v27 = vld [vmem:[%s364_s5] ss:$0 sm:$0xff]  ;;  %p265_p0 = scmp.ne.s32.totalorder %s202_s14, %s264_s4  ;;  %p270_p2 = scmp.lt.s32.totalorder %s264_s4, %s264_s4 }
   0x9   :  { %234 = vmatmul.mubr.msk.bf16.vlgmr.msra.gmra.mxu0 %vm50_vm1, %v26_v4  ;;  %240 = vmatpush3.bf16.msra.mxu1 %v255_v6 }
   0xa   :  { %241 = vmatprep.subr.bf16.mxu1 %v286_v1  ;;  %p271_p3 = por %p270_p2, %p269_p1 }
   0xc   :  { %p272_p4 = pnand %p271_p3, %p265_p0 }
   0xd   :  { %242 = vmatpush3.bf16.msra.mxu1 %v256_v7 }
   0xe   :  { %243 = vmatprep.subr.bf16.mxu1 %v286_v1 }
  0x11   :  { %244 = vmatpush3.bf16.msra.mxu1 %v257_v8 }
  0xc9   :  { %v88_v10 = vpop.f32.mrf.mxu0 }
  0xca   :  { %v89_v11 = vadd.f32 %v209_v9, %v88_v10 }
  0xcb   :  { %v235_v12 = vpop.f32.mrf.mxu0 }
  0xcc   :  { %258 = vtanh.f32 %v89_v11 }
  0xcd   :  { %v91_v13 = vpop.f32.mrf.mxu0 }
  0xcf   :  { %v236_v14 = vpop.f32.mrf.mxu0 }
  0xd9   :  { %v259_v15 = vpop.eup %258 }
  0xda   :  { %v95_v16 = vpack.c.bf16 %v259_v15, %v259_v15 }
  0xdc   :  { %246 = vmatmul.mubr.msk.bf16.vlgmr.msra.gmra.mxu1 %vm135_vm2, %v95_v16 }
 0x19c   :  { %v173_v18 = vpop.f32.mrf.mxu1 }
 0x19d   :  { %v174_v19 = vadd.f32 %v213_v17, %v173_v18 }
 0x19e   :  { %v247_v20 = vpop.f32.mrf.mxu1 }
 0x19f   :  { %v219_v21 = vmul.f32 -1.442695, %v174_v19 }
 0x1a0   :  { %v176_v22 = vpop.f32.mrf.mxu1 }
 0x1a1   :  { %260 = vpow2.f32 %v219_v21 }
 0x1a2   :  { %v248_v23 = vpop.f32.mrf.mxu1 }
 0x1ae   :  { %v261_v24 = vpop.eup %260 }
 0x1af   :  { %v182_v25 = vadd.f32 1.0, %v261_v24 }
 0x1b1   :  { %262 = vrcp.f32 %v182_v25 }
 0x1be   :  { %v263_v26 = vpop.eup %262 }
 0x1bf   :  { %v185_v28 = vadd.f32 0.618, %v263_v26 }
 0x1c1   :  { %v193_v29 = vmul.f32 %v220_v27, %v185_v28 }
 0x1c3   :  { %194 = vst.msk [vmem:[#allocation2] sm:$0xff] %vm50_vm1, %v193_v29 }
 0x1c4   :  { %275 = shalt.err (!%p272_p4)
}
 0x1c5   :  { %204 = dma.vmem_to_hbm [thread:$0]  %s202_s14, 128, %s365_s6, [#allocation3]  }
 0x1c6   :  { %284 = dma.done.wait [#allocation3], 128  }
 0x1c7   :  { %285 = vsyncadd [#allocation3], 4294967168 }
 0x1c8   :  { %208 = vsyncpa [#allocation3], 1 }

// kernel: tpu_custom_call.1
= control target key start
LH: loop header
LB: loop body
LE: loop exit
PB: predicated region body
PF: predicated region fallthrough
CT: control target
= control target key end

     0   :  { %v286_v1 = vmov 0.0   ;;  %vm287_vm0 = vmmov 0   ;;  %s359_s0 = inlined_call_operand.vmem [shape: f32[8,32], index: 0, kind: input, shape index: {}]   ;;  %s360_s1 = inlined_call_operand.vmem [shape: bf16[32,64], index: 1, kind: input, shape index: {}]   ;;  %s361_s2 = inlined_call_operand.vmem [shape: f32[1,64], index: 2, kind: input, shape index: {}]   ;;  %s362_s3 = inlined_call_operand.vmem [shape: bf16[64,32], index: 3, kind: input, shape index: {}]   ;;  %s363_s4 = inlined_call_operand.vmem [shape: f32[1,32], index: 4, kind: input, shape index: {}]   ;;  %s364_s5 = inlined_call_operand.vmem [shape: f32[1,32], index: 5, kind: input, shape index: {}]   ;;  %s365_s6 = inlined_call_operand.hbm [shape: f32[8,32], index: 6, kind: output, shape index: {}]  }
   0x1   :  { %v252_v0 = vld [vmem:[%s360_s1 + $0x8] sm:$0xff]   ;;  %229 = vmatprep.subr.bf16.mxu0 %v286_v1  ;;  %237 = vmatprep.subr.bf16.mxu1 %v286_v1  ;;  %v253_v2 = vld [vmem:[%s360_s1] sm:$0xff]  }
   0x2   :  { %230 = vmatpush3.bf16.msra.mxu0 %v252_v0  ;;  %233 = vmatprep.mubr.msk.bf16.mxu0 %vm287_vm0, %v286_v1  ;;  %v25_v3 = vld [vmem:[%s359_s0] sm:$0xff] }
   0x3   :  { %231 = vmatprep.subr.bf16.mxu0 %v286_v1  ;;  %245 = vmatprep.mubr.msk.bf16.mxu1 %vm287_vm0, %v286_v1  ;;  %v26_v4 = vpack.c.bf16 %v25_v3, %v25_v3 }
   0x4   :  { %11 = vsyncpa [#allocation3], 0  ;;  %vm50_vm1 = vcmask 261120   ;;  %v254_v5 = vld [vmem:[%s362_s3 + $0x18] sm:$0xff]   ;;  %v255_v6 = vld [vmem:[%s362_s3 + $0x10] sm:$0xff]   ;;  %vm135_vm2 = vcmask 523264  }
   0x5   :  { %238 = vmatpush3.bf16.msra.mxu1 %v254_v5  ;;  %v256_v7 = vld [vmem:[%s362_s3 + $0x8] sm:$0xff]   ;;  %v257_v8 = vld [vmem:[%s362_s3] sm:$0xff]   ;;  %s288_s13 = smov [#allocation2]  }
   0x6   :  { %232 = vmatpush3.bf16.msra.mxu0 %v253_v2  ;;  %239 = vmatprep.subr.bf16.mxu1 %v286_v1  ;;  %v209_v9 = vld [vmem:[%s361_s2] ss:$0 sm:$0xff]  ;;  %s201_s14 = sshll.u32 %s288_s13, 4  ;;  %s202_s14 = int_to_ptr.vmem [resolvable:$true] %s201_s14 }
   0x7   :  { %v213_v17 = vld [vmem:[%s363_s4] ss:$0 sm:$0xff]  ;;  %s264_s4 = scalar_lea.vmem %s202_s14, 128  ;;  %p269_p1 = scmp.lt.s32.totalorder %s202_s14, %s202_s14 }
   0x8   :  { %v220_v27 = vld [vmem:[%s364_s5] ss:$0 sm:$0xff]  ;;  %p265_p0 = scmp.ne.s32.totalorder %s202_s14, %s264_s4  ;;  %p270_p2 = scmp.lt.s32.totalorder %s264_s4, %s264_s4 }
   0x9   :  { %234 = vmatmul.mubr.msk.bf16.vlgmr.msra.gmra.mxu0 %vm50_vm1, %v26_v4  ;;  %240 = vmatpush3.bf16.msra.mxu1 %v255_v6 }
   0xa   :  { %241 = vmatprep.subr.bf16.mxu1 %v286_v1  ;;  %p271_p3 = por %p270_p2, %p269_p1 }
   0xc   :  { %p272_p4 = pnand %p271_p3, %p265_p0 }
   0xd   :  { %242 = vmatpush3.bf16.msra.mxu1 %v256_v7 }
   0xe   :  { %243 = vmatprep.subr.bf16.mxu1 %v286_v1 }
  0x11   :  { %244 = vmatpush3.bf16.msra.mxu1 %v257_v8 }
  0xc9   :  { %v88_v10 = vpop.f32.mrf.mxu0 }
  0xca   :  { %v89_v11 = vadd.f32 %v209_v9, %v88_v10 }
  0xcb   :  { %v235_v12 = vpop.f32.mrf.mxu0 }
  0xcc   :  { %258 = vtanh.f32 %v89_v11 }
  0xcd   :  { %v91_v13 = vpop.f32.mrf.mxu0 }
  0xcf   :  { %v236_v14 = vpop.f32.mrf.mxu0 }
  0xd9   :  { %v259_v15 = vpop.eup %258 }
  0xda   :  { %v95_v16 = vpack.c.bf16 %v259_v15, %v259_v15 }
  0xdc   :  { %246 = vmatmul.mubr.msk.bf16.vlgmr.msra.gmra.mxu1 %vm135_vm2, %v95_v16 }
 0x19c   :  { %v173_v18 = vpop.f32.mrf.mxu1 }
 0x19d   :  { %v174_v19 = vadd.f32 %v213_v17, %v173_v18 }
 0x19e   :  { %v247_v20 = vpop.f32.mrf.mxu1 }
 0x19f   :  { %v219_v21 = vmul.f32 -1.442695, %v174_v19 }
 0x1a0   :  { %v176_v22 = vpop.f32.mrf.mxu1 }
 0x1a1   :  { %260 = vpow2.f32 %v219_v21 }
 0x1a2   :  { %v248_v23 = vpop.f32.mrf.mxu1 }
 0x1ae   :  { %v261_v24 = vpop.eup %260 }
 0x1af   :  { %v182_v25 = vadd.f32 1.0, %v261_v24 }
 0x1b1   :  { %262 = vrcp.f32 %v182_v25 }
 0x1be   :  { %v263_v26 = vpop.eup %262 }
 0x1bf   :  { %v185_v28 = vadd.f32 0.618, %v263_v26 }
 0x1c1   :  { %v193_v29 = vmul.f32 %v220_v27, %v185_v28 }
 0x1c3   :  { %194 = vst.msk [vmem:[#allocation2] sm:$0xff] %vm50_vm1, %v193_v29 }
 0x1c4   :  { %275 = shalt.err (!%p272_p4)
}
 0x1c5   :  { %204 = dma.vmem_to_hbm [thread:$0]  %s202_s14, 128, %s365_s6, [#allocation3]  }
 0x1c6   :  { %284 = dma.done.wait [#allocation3], 128  }
 0x1c7   :  { %285 = vsyncadd [#allocation3], 4294967168 }
 0x1c8   :  { %208 = vsyncpa [#allocation3], 1 }

</bundles_post_ra>
